<compile_context>
chip_gen: v5e
topology: v5e:2x2
jax: 0.10.0
libtpu: 0.0.40
codegen_flags: <defaults>
</compile_context>

<pallas_src>
import functools

import jax
import jax.numpy as jnp
from jax.experimental import pallas as pl
from jax.experimental.pallas import tpu as pltpu

EPS = 1e-5


# ---------------------------------------------------------------------------
# Per-generation VMEM capacity (v5e/v6e: 128 MiB, v7x: 64 MiB per TensorCore).
# ---------------------------------------------------------------------------
def _vmem_capacity_bytes():
    try:
        cap = getattr(pltpu.get_tpu_info(), "vmem_capacity_bytes", None)
        if cap:
            return int(cap)
    except Exception:
        pass
    return 64 * 1024 * 1024   # conservative default (v7x per-TC)


# ---------------------------------------------------------------------------
# Pass 1 (large N only): BatchNorm1d batch statistics folded into scale/shift.
#   scale = gamma / sqrt(var + eps)      shift = beta - mean * scale
# Output refs double as accumulators (sum(x), sum(x^2)) across the N grid axis.
# ---------------------------------------------------------------------------
def bn_fold_kernel(x_ref, gamma_ref, beta_ref, scale_ref, shift_ref, *, n_total):
    i = pl.program_id(0)

    @pl.when(i == 0)
    def _():
        scale_ref[...] = jnp.zeros_like(scale_ref)   # accumulates sum(x)
        shift_ref[...] = jnp.zeros_like(shift_ref)   # accumulates sum(x*x)

    xb = x_ref[...].astype(jnp.float32)
    scale_ref[...] += jnp.sum(xb, axis=0, keepdims=True)
    shift_ref[...] += jnp.sum(xb * xb, axis=0, keepdims=True)

    @pl.when(i == pl.num_programs(0) - 1)
    def _():
        inv_n = 1.0 / n_total
        mean = scale_ref[...] * inv_n
        var = shift_ref[...] * inv_n - mean * mean          # biased variance
        inv_std = jax.lax.rsqrt(jnp.maximum(var, 0.0) + EPS)
        s = gamma_ref[...] * inv_std
        scale_ref[...] = s
        shift_ref[...] = beta_ref[...] - mean * s


def bn_fold(x, gamma, beta, *, stats_block_n, vmem_limit):
    N, H = x.shape
    return pl.pallas_call(
        functools.partial(bn_fold_kernel, n_total=float(N)),
        out_shape=(jax.ShapeDtypeStruct((1, H), jnp.float32),
                   jax.ShapeDtypeStruct((1, H), jnp.float32)),
        grid_spec=pltpu.PrefetchScalarGridSpec(
            num_scalar_prefetch=0,
            grid=(N // stats_block_n,),
            in_specs=[
                pl.BlockSpec((stats_block_n, H), lambda i: (i, 0)),  # x tile
                pl.BlockSpec((1, H), lambda i: (0, 0)),              # gamma
                pl.BlockSpec((1, H), lambda i: (0, 0)),              # beta
            ],
            out_specs=(pl.BlockSpec((1, H), lambda i: (0, 0)),
                       pl.BlockSpec((1, H), lambda i: (0, 0)))),
        compiler_params=pltpu.CompilerParams(
            dimension_semantics=("arbitrary",),                      # reduction
            vmem_limit_bytes=vmem_limit),
    )(x, gamma, beta)


# ---------------------------------------------------------------------------
# Pass 2a: weight-resident fused block.  Grid = (N/block_n,) ["parallel"].
#   xn = x*scale + shift ; out = relu(xn@W1+b1) @ W2 + b2 + xn
# W1/W2 have constant index_maps -> DMA'd once, reused for every N-tile.
# ---------------------------------------------------------------------------
def block_resident_kernel(x_ref, scale_ref, shift_ref, w1_ref, b1_ref,
                          w2_ref, b2_ref, o_ref):
    xn = x_ref[...].astype(jnp.float32) * scale_ref[...] + shift_ref[...]
    xn_bf = xn.astype(jnp.bfloat16)
    h = jnp.dot(xn_bf, w1_ref[...],
                preferred_element_type=jnp.float32) + b1_ref[...]
    h = jnp.maximum(h, 0.0)
    # bf16 cast before the 2nd matmul (MXU fast path, f32 accumulation).
    y = jnp.dot(h.astype(jnp.bfloat16), w2_ref[...],
                preferred_element_type=jnp.float32)
    o_ref[...] = (y + b2_ref[...] + xn).astype(o_ref.dtype)


# ---------------------------------------------------------------------------
# Pass 2b: K-tiled fallback (weights too large for VMEM residency).
# Grid = (N/block_n [parallel], 4H/block_k [arbitrary]).
# ---------------------------------------------------------------------------
def block_ktiled_kernel(x_ref, scale_ref, shift_ref, w1_ref, b1_ref,
                        w2_ref, b2_ref, o_ref, acc_ref, xn_ref):
    k = pl.program_id(1)

    @pl.when(k == 0)
    def _():
        xn = x_ref[...].astype(jnp.float32) * scale_ref[...] + shift_ref[...]
        xn_ref[...] = xn.astype(jnp.bfloat16)
        acc_ref[...] = xn + b2_ref[...]          # residual + output bias (f32)

    h = jnp.dot(xn_ref[...], w1_ref[...],
                preferred_element_type=jnp.float32) + b1_ref[...]
    h = jnp.maximum(h, 0.0)
    acc_ref[...] += jnp.dot(h.astype(jnp.bfloat16), w2_ref[...],
                            preferred_element_type=jnp.float32)

    @pl.when(k == pl.num_programs(1) - 1)
    def _():
        o_ref[...] = acc_ref[...].astype(o_ref.dtype)


# ---------------------------------------------------------------------------
# Tile selection helpers.
# ---------------------------------------------------------------------------
def _pick_block_n(N):
    if N <= 256:
        return N                            # single step: fixed overhead dominates
    for cand in (256, 128, 64, 32, 16, 8):  # keep >= 2 steps for v7x megacore
        if N % cand == 0 and N // cand >= 2:
            return cand
    return N


def _pick_stats_block(N, H):
    max_rows = max(8, min(N, (8 * 1024 * 1024) // max(1, H * 4)))
    if N <= max_rows:
        return N
    for cand in (2048, 1024, 512, 256, 128, 64, 32, 16, 8):
        if cand <= max_rows and N % cand == 0:
            return cand
    return N


def _pick_block_k(H4):
    for cand in (512, 256, 128):            # keep (block_n, block_k) f32 h bounded
        if H4 % cand == 0:
            return cand
    return H4


# ---------------------------------------------------------------------------
# Wrapper.
# ---------------------------------------------------------------------------
def simple_block_v2(x, gamma, beta, w1, b1, w2, b2, *, block_n=None, block_k=None):
    """x: (N, H); w1: (H, 4H); w2: (4H, H); gamma/beta/biases as (1, dim) rows.

    Weights are PRE-TRANSPOSED to (in, out) so the kernel does y = x @ W + b,
    matching PyTorch's y = x @ W_pt.T + b.  Training-mode BatchNorm1d (batch
    statistics, eps=1e-5).
    """
    N, H = x.shape
    H4 = w1.shape[1]

    vmem_cap = _vmem_capacity_bytes()
    vmem_budget = (vmem_cap * 3) // 4                          # leave headroom
    vmem_limit = int(min(max(vmem_budget, 32 * 1024 * 1024), 100 * 1024 * 1024))

    if block_n is None:
        block_n = _pick_block_n(N)
    assert N % block_n == 0 and (block_n % 8 == 0 or block_n == N)

    # --- Pass 1: fold BN batch stats into per-feature scale/shift (1, H). ---
    if N <= 256:
        # Small problem: let XLA compute the stats; launch overhead >> work.
        xf = x.astype(jnp.float32)
        mean = jnp.mean(xf, axis=0, keepdims=True)
        var = jnp.mean(jnp.square(xf - mean), axis=0, keepdims=True)
        scale = gamma * jax.lax.rsqrt(var + EPS)
        shift = beta - mean * scale
    else:
        stats_block = _pick_stats_block(N, H)
        scale, shift = bn_fold(x, gamma, beta, stats_block_n=stats_block,
                               vmem_limit=vmem_limit)

    # bf16 weights: halves HBM weight traffic and feeds the MXU's fast path.
    w1_bf = w1.astype(jnp.bfloat16)
    w2_bf = w2.astype(jnp.bfloat16)

    # --- Residency check: full bf16 W1+W2 (double-buffered) + tiles in VMEM. --
    weights_bytes = 2 * (H * H4 + H4 * H) * 2     # double-buffered bf16 W1+W2
    resident_need = (weights_bytes
                     + 2 * block_n * H * 4        # x tiles (f32, dbuf)
                     + 2 * block_n * H * 4        # out tiles (f32, dbuf)
                     + block_n * H4 * 4           # f32 intermediate h
                     + 4 * (H4 + 3 * H) * 4       # biases / scale / shift
                     + (2 << 20))                 # headroom
    force_ktiled = block_k is not None and block_k < H4
    use_resident = (resident_need <= vmem_budget) and not force_ktiled

    if use_resident:
        return pl.pallas_call(
            block_resident_kernel,
            out_shape=jax.ShapeDtypeStruct((N, H), x.dtype),
            grid_spec=pltpu.PrefetchScalarGridSpec(
                num_scalar_prefetch=0,
                grid=(N // block_n,),
                in_specs=[
                    pl.BlockSpec((block_n, H), lambda i: (i, 0)),   # x tile
                    pl.BlockSpec((1, H), lambda i: (0, 0)),         # scale
                    pl.BlockSpec((1, H), lambda i: (0, 0)),         # shift
                    pl.BlockSpec((H, H4), lambda i: (0, 0)),        # W1 resident
                    pl.BlockSpec((1, H4), lambda i: (0, 0)),        # b1
                    pl.BlockSpec((H4, H), lambda i: (0, 0)),        # W2 resident
                    pl.BlockSpec((1, H), lambda i: (0, 0)),         # b2
                ],
                out_specs=pl.BlockSpec((block_n, H), lambda i: (i, 0))),
            compiler_params=pltpu.CompilerParams(
                dimension_semantics=("parallel",),
                vmem_limit_bytes=vmem_limit),
        )(x, scale, shift, w1_bf, b1, w2_bf, b2)

    # --- Fallback: stream W1/W2 in K blocks (H too large for residency). ---
    if block_k is None:
        block_k = _pick_block_k(H4)
    assert H4 % block_k == 0 and (block_k % 128 == 0 or block_k == H4)

    return pl.pallas_call(
        block_ktiled_kernel,
        out_shape=jax.ShapeDtypeStruct((N, H), x.dtype),
        grid_spec=pltpu.PrefetchScalarGridSpec(
            num_scalar_prefetch=0,
            grid=(N // block_n, H4 // block_k),
            in_specs=[
                pl.BlockSpec((block_n, H), lambda i, k: (i, 0)),    # x tile
                pl.BlockSpec((1, H), lambda i, k: (0, 0)),          # scale
                pl.BlockSpec((1, H), lambda i, k: (0, 0)),          # shift
                pl.BlockSpec((H, block_k), lambda i, k: (0, k),     # W1 col block
                             pipeline_mode=pl.Buffered(3)),
                pl.BlockSpec((1, block_k), lambda i, k: (0, k)),    # b1 slice
                pl.BlockSpec((block_k, H), lambda i, k: (k, 0),     # W2 row block
                             pipeline_mode=pl.Buffered(3)),
                pl.BlockSpec((1, H), lambda i, k: (0, 0)),          # b2
            ],
            out_specs=pl.BlockSpec((block_n, H), lambda i, k: (i, 0)),
            scratch_shapes=[
                pltpu.VMEM((block_n, H), jnp.float32),   # f32 accumulator
                pltpu.VMEM((block_n, H), jnp.bfloat16),  # resident bf16 xn
            ]),
        compiler_params=pltpu.CompilerParams(
            dimension_semantics=("parallel", "arbitrary"),
            vmem_limit_bytes=vmem_limit),
    )(x, scale, shift, w1_bf, b1, w2_bf, b2)


# ---------------------------------------------------------------------------
# Init + references
# ---------------------------------------------------------------------------
def init_params(key, hidden_size):
    """Deterministic PyTorch-style init (uniform(-1/sqrt(fan_in), 1/sqrt(fan_in)))."""
    h4 = hidden_size * 4
    k1, k2, k3, k4 = jax.random.split(key, 4)

    bound1 = 1.0 / jnp.sqrt(hidden_size)
    w1 = jax.random.uniform(k1, (hidden_size, h4), jnp.float32, -bound1, bound1)
    b1 = jax.random.uniform(k2, (1, h4), jnp.float32, -bound1, bound1)

    bound2 = 1.0 / jnp.sqrt(h4)
    w2 = jax.random.uniform(k3, (h4, hidden_size), jnp.float32, -bound2, bound2)
    b2 = jax.random.uniform(k4, (1, hidden_size), jnp.float32, -bound2, bound2)

    gamma = jnp.ones((1, hidden_size), jnp.float32)   # BatchNorm1d weight init
    beta = jnp.zeros((1, hidden_size), jnp.float32)   # BatchNorm1d bias init
    return gamma, beta, w1, b1, w2, b2


def reference_f32(x, gamma, beta, w1, b1, w2, b2):
    mean = jnp.mean(x, axis=0, keepdims=True)
    var = jnp.mean((x - mean) ** 2, axis=0, keepdims=True)
    xn = (x - mean) * jax.lax.rsqrt(var + EPS) * gamma + beta
    h = jnp.maximum(xn @ w1 + b1, 0.0)
    return h @ w2 + b2 + xn


def reference_bf16(x, gamma, beta, w1, b1, w2, b2):
    # Same math with bf16 MXU inputs / f32 accumulation (matches kernel dtypes).
    mean = jnp.mean(x, axis=0, keepdims=True)
    var = jnp.mean((x - mean) ** 2, axis=0, keepdims=True)
    xn = (x - mean) * jax.lax.rsqrt(var + EPS) * gamma + beta
    h = jnp.dot(xn.astype(jnp.bfloat16), w1.astype(jnp.bfloat16),
                preferred_element_type=jnp.float32) + b1
    h = jnp.maximum(h, 0.0)
    y = jnp.dot(h.astype(jnp.bfloat16), w2.astype(jnp.bfloat16),
                preferred_element_type=jnp.float32)
    return y + b2 + xn


if __name__ == "__main__":
    key = jax.random.PRNGKey(0)
    kx1, kp, kx2 = jax.random.split(key, 3)

    hidden = 128                      # lane-dense H
    params = init_params(kp, hidden)

    # --- Small shape: XLA stats + single-step weight-resident fused kernel. ---
    batch = 64
    x = jax.random.normal(kx1, (batch, hidden), jnp.float32)
    out = jax.block_until_ready(simple_block_v2(x, *params))
    assert out.shape == (batch, hidden)
    assert jnp.allclose(out, reference_bf16(x, *params), atol=3e-3, rtol=3e-3), \
        "mismatch vs bf16 reference (small)"
    assert jnp.allclose(out, reference_f32(x, *params), atol=5e-2, rtol=5e-2), \
        "mismatch vs f32 reference (small)"

    # --- Larger N: Pallas stats pass + multi-tile parallel N axis, resident W. -
    batch2 = 512
    x2 = jax.random.normal(kx2, (batch2, hidden), jnp.float32)
    out2 = jax.block_until_ready(simple_block_v2(x2, *params))
    assert out2.shape == (batch2, hidden)
    assert jnp.allclose(out2, reference_bf16(x2, *params), atol=3e-3, rtol=3e-3), \
        "mismatch vs bf16 reference (large)"
    assert jnp.allclose(out2, reference_f32(x2, *params), atol=5e-2, rtol=5e-2), \
        "mismatch vs f32 reference (large)"

    print("KERNEL_OK")
</pallas_src>

<mosaic_0001>
module attributes {stable_mosaic.version = 11 : i64} {
  func.func @block_resident_kernel(%arg0: i32, %arg1: memref<64x128xf32, #tpu.memory_space<vmem>>, %arg2: memref<1x128xf32, #tpu.memory_space<vmem>>, %arg3: memref<1x128xf32, #tpu.memory_space<vmem>>, %arg4: memref<128x512xbf16, #tpu.memory_space<vmem>>, %arg5: memref<1x512xf32, #tpu.memory_space<vmem>>, %arg6: memref<512x128xbf16, #tpu.memory_space<vmem>>, %arg7: memref<1x128xf32, #tpu.memory_space<vmem>>, %arg8: memref<64x128xf32, #tpu.memory_space<vmem>>) attributes {dimension_semantics = [#tpu.dimension_semantics<parallel>], iteration_bounds = array<i64: 1>, scalar_prefetch = 0 : i64, scratch_operands = 0 : i64, tpu.core_type = #tpu.core_type<tc>, window_params = [{transform_indices = @transform_0, window_bounds = array<i64: 64, 128>}, {pipeline_mode = #tpu.pipeline_mode<synchronous>, transform_indices = @transform_1, window_bounds = array<i64: 1, 128>}, {pipeline_mode = #tpu.pipeline_mode<synchronous>, transform_indices = @transform_2, window_bounds = array<i64: 1, 128>}, {pipeline_mode = #tpu.pipeline_mode<synchronous>, transform_indices = @transform_3, window_bounds = array<i64: 128, 512>}, {pipeline_mode = #tpu.pipeline_mode<synchronous>, transform_indices = @transform_4, window_bounds = array<i64: 1, 512>}, {pipeline_mode = #tpu.pipeline_mode<synchronous>, transform_indices = @transform_5, window_bounds = array<i64: 512, 128>}, {pipeline_mode = #tpu.pipeline_mode<synchronous>, transform_indices = @transform_6, window_bounds = array<i64: 1, 128>}, {transform_indices = @transform_7, window_bounds = array<i64: 64, 128>}]} {
    %c0 = arith.constant 0 : index
    %c0_0 = arith.constant 0 : index
    %0 = vector.load %arg1[%c0, %c0_0] : memref<64x128xf32, #tpu.memory_space<vmem>>, vector<64x128xf32>
    %c0_1 = arith.constant 0 : index
    %c0_2 = arith.constant 0 : index
    %1 = vector.load %arg2[%c0_1, %c0_2] : memref<1x128xf32, #tpu.memory_space<vmem>>, vector<1x128xf32>
    %2 = vector.broadcast %1 : vector<1x128xf32> to vector<64x128xf32>
    %3 = arith.mulf %0, %2 : vector<64x128xf32>
    %c0_3 = arith.constant 0 : index
    %c0_4 = arith.constant 0 : index
    %4 = vector.load %arg3[%c0_3, %c0_4] : memref<1x128xf32, #tpu.memory_space<vmem>>, vector<1x128xf32>
    %5 = vector.broadcast %4 : vector<1x128xf32> to vector<64x128xf32>
    %6 = arith.addf %3, %5 : vector<64x128xf32>
    %7 = arith.truncf %6 : vector<64x128xf32> to vector<64x128xbf16>
    %c0_5 = arith.constant 0 : index
    %c0_6 = arith.constant 0 : index
    %8 = vector.load %arg4[%c0_5, %c0_6] : memref<128x512xbf16, #tpu.memory_space<vmem>>, vector<128x512xbf16>
    %cst = arith.constant dense<0.000000e+00> : vector<64x512xf32>
    %9 = tpu.matmul %7, %8, %cst {dimension_numbers = #tpu.dot_dimension_numbers<[1], [0], [0], [1], [0, 0, 1, 1], [], []>} : vector<64x128xbf16>, vector<128x512xbf16>, vector<64x512xf32> -> vector<64x512xf32>
    %c0_7 = arith.constant 0 : index
    %c0_8 = arith.constant 0 : index
    %10 = vector.load %arg5[%c0_7, %c0_8] : memref<1x512xf32, #tpu.memory_space<vmem>>, vector<1x512xf32>
    %11 = vector.broadcast %10 : vector<1x512xf32> to vector<64x512xf32>
    %12 = arith.addf %9, %11 : vector<64x512xf32>
    %cst_9 = arith.constant 0.000000e+00 : f32
    %13 = vector.broadcast %cst_9 : f32 to vector<64x512xf32>
    %14 = arith.maximumf %12, %13 : vector<64x512xf32>
    %15 = arith.truncf %14 : vector<64x512xf32> to vector<64x512xbf16>
    %c0_10 = arith.constant 0 : index
    %c0_11 = arith.constant 0 : index
    %16 = vector.load %arg6[%c0_10, %c0_11] : memref<512x128xbf16, #tpu.memory_space<vmem>>, vector<512x128xbf16>
    %cst_12 = arith.constant dense<0.000000e+00> : vector<64x128xf32>
    %17 = tpu.matmul %15, %16, %cst_12 {dimension_numbers = #tpu.dot_dimension_numbers<[1], [0], [0], [1], [0, 0, 1, 1], [], []>} : vector<64x512xbf16>, vector<512x128xbf16>, vector<64x128xf32> -> vector<64x128xf32>
    %c0_13 = arith.constant 0 : index
    %c0_14 = arith.constant 0 : index
    %18 = vector.load %arg7[%c0_13, %c0_14] : memref<1x128xf32, #tpu.memory_space<vmem>>, vector<1x128xf32>
    %19 = vector.broadcast %18 : vector<1x128xf32> to vector<64x128xf32>
    %20 = arith.addf %17, %19 : vector<64x128xf32>
    %21 = arith.addf %20, %6 : vector<64x128xf32>
    %c0_15 = arith.constant 0 : index
    %c0_16 = arith.constant 0 : index
    %22 = vector.load %arg8[%c0_15, %c0_16] : memref<64x128xf32, #tpu.memory_space<vmem>>, vector<64x128xf32>
    tpu.vector_store %arg8[%c0_15, %c0_16], %21 {strides = array<i32>} : memref<64x128xf32, #tpu.memory_space<vmem>>, vector<64x128xf32>,
    return
  }
  func.func @transform_0(%arg0: i32) -> (i32, i32) {
    %c0_i32 = arith.constant 0 : i32
    %c0_i32_0 = arith.constant 0 : i32
    return %arg0, %c0_i32 : i32, i32
  }
  func.func @transform_1(%arg0: i32) -> (i32, i32) {
    %c0_i32 = arith.constant 0 : i32
    %c0_i32_0 = arith.constant 0 : i32
    %c0_i32_1 = arith.constant 0 : i32
    return %c0_i32, %c0_i32_0 : i32, i32
  }
  func.func @transform_2(%arg0: i32) -> (i32, i32) {
    %c0_i32 = arith.constant 0 : i32
    %c0_i32_0 = arith.constant 0 : i32
    %c0_i32_1 = arith.constant 0 : i32
    return %c0_i32, %c0_i32_0 : i32, i32
  }
  func.func @transform_3(%arg0: i32) -> (i32, i32) {
    %c0_i32 = arith.constant 0 : i32
    %c0_i32_0 = arith.constant 0 : i32
    %c0_i32_1 = arith.constant 0 : i32
    return %c0_i32, %c0_i32_0 : i32, i32
  }
  func.func @transform_4(%arg0: i32) -> (i32, i32) {
    %c0_i32 = arith.constant 0 : i32
    %c0_i32_0 = arith.constant 0 : i32
    %c0_i32_1 = arith.constant 0 : i32
    return %c0_i32, %c0_i32_0 : i32, i32
  }
  func.func @transform_5(%arg0: i32) -> (i32, i32) {
    %c0_i32 = arith.constant 0 : i32
    %c0_i32_0 = arith.constant 0 : i32
    %c0_i32_1 = arith.constant 0 : i32
    return %c0_i32, %c0_i32_0 : i32, i32
  }
  func.func @transform_6(%arg0: i32) -> (i32, i32) {
    %c0_i32 = arith.constant 0 : i32
    %c0_i32_0 = arith.constant 0 : i32
    %c0_i32_1 = arith.constant 0 : i32
    return %c0_i32, %c0_i32_0 : i32, i32
  }
  func.func @transform_7(%arg0: i32) -> (i32, i32) {
    %c0_i32 = arith.constant 0 : i32
    %c0_i32_0 = arith.constant 0 : i32
    return %arg0, %c0_i32 : i32, i32
  }
}

</mosaic_0001>

<bundles_post_ra>
// kernel: tpu_custom_call.1
= control target key start
LH: loop header
LB: loop body
LE: loop exit
PB: predicated region body
PF: predicated region fallthrough
CT: control target
= control target key end

     0   :  { %12 = vsyncpa [#allocation3], 0  ;;  %s1587_s0 = inlined_call_operand.hbm [shape: f32[64,128], index: 0, kind: input, shape index: {}]   ;;  %s1588_s1 = inlined_call_operand.hbm [shape: f32[1,128], index: 1, kind: input, shape index: {}]   ;;  %s1589_s2 = inlined_call_operand.vmem [shape: f32[1,128], index: 2, kind: input, shape index: {}]   ;;  %s1590_s3 = inlined_call_operand.hbm [shape: bf16[128,512], index: 3, kind: input, shape index: {}]   ;;  %s1591_s4 = inlined_call_operand.hbm [shape: f32[1,512], index: 4, kind: input, shape index: {}]   ;;  %s1592_s5 = inlined_call_operand.hbm [shape: bf16[512,128], index: 5, kind: input, shape index: {}]   ;;  %s1593_s6 = inlined_call_operand.vmem [shape: f32[1,128], index: 6, kind: input, shape index: {}]   ;;  %s1594_s7 = inlined_call_operand.hbm [shape: f32[64,128], index: 7, kind: output, shape index: {}]  }
   0x1   :  { %13 = vsyncpa [#allocation6], 0 }
   0x2   :  { %14 = vsyncpa [#allocation9], 0  ;;  %s34_s26 = sshll.u32 %s1588_s1, 4  ;;  %s35_s26 = int_to_ptr.hbm [resolvable:$true] %s34_s26 }
   0x3   :  { %15 = vsyncpa [#allocation4], 0  ;;  %s1403_s27 = smov [#allocation5]   ;;  %s60_s8 = sshll.u32 %s1591_s4, 4  ;;  %s61_s8 = int_to_ptr.hbm [resolvable:$true] %s60_s8 }
   0x4   :  { %s36_s28 = sshll.u32 %s1403_s27, 4  ;;  %s1404_s9 = smov [#allocation8]   ;;  %s37_s28 = int_to_ptr.vmem [resolvable:$true] %s36_s28 }
   0x5   :  { %39 = dma.hbm_to_vmem [thread:$0]  %s35_s26, 16, %s37_s28, [#allocation6]  }
   0x6   :  { %s62_s10 = sshll.u32 %s1404_s9, 4  ;;  %s20_s13 = sshll.u32 %s1587_s0, 4  ;;  %s63_s10 = int_to_ptr.vmem [resolvable:$true] %s62_s10  ;;  %s21_s13 = int_to_ptr.hbm [resolvable:$true] %s20_s13 }
   0x7   :  { %65 = dma.hbm_to_vmem [thread:$0]  %s61_s8, 64, %s63_s10, [#allocation9]  }
   0x8   :  { %s1405_s1 = smov [#allocation2]   ;;  %s46_s17 = sshll.u32 %s1590_s3, 4  ;;  %s47_s17 = int_to_ptr.hbm [resolvable:$true] %s46_s17 }
   0x9   :  { %s22_s14 = sshll.u32 %s1405_s1, 4  ;;  %s1406_s18 = smov 128   ;;  %s23_s14 = int_to_ptr.vmem [resolvable:$true] %s22_s14 }
   0xa   :  { %s1407_s4 = smov 8   ;;  %s1408_s19 = smov [#allocation7]  }
   0xb   :  { %28 = dma.hbm_to_vmem [thread:$0]  %s21_s13, 1024, %s23_s14, [#allocation3], %s1406_s18, %s1406_s18, %s1407_s4  }
   0xc   :  { %s48_s20 = sshll.u32 %s1408_s19, 4  ;;  %s1409_s0 = smov 256   ;;  %s49_s20 = int_to_ptr.vmem [resolvable:$true] %s48_s20 }
   0xd   :  { %s1410_s21 = smov 16   ;;  %s70_s24 = sshll.u32 %s1592_s5, 4  ;;  %s71_s24 = int_to_ptr.hbm [resolvable:$true] %s70_s24 }
   0xe   :  { %54 = dma.hbm_to_vmem [thread:$0]  %s47_s17, 4096, %s49_s20, [#allocation6], %s1409_s0, %s1409_s0, %s1410_s21  }
   0xf   :  { %s1411_s25 = smov [#allocation10]   ;;  %s1412_s26 = smov 64  }
  0x10   :  { %s72_s3 = sshll.u32 %s1411_s25, 4  ;;  %s1413_s27 = smov 4   ;;  %s73_s3 = int_to_ptr.vmem [resolvable:$true] %s72_s3 }
  0x11   :  { %78 = dma.hbm_to_vmem [thread:$0]  %s71_s24, 4096, %s73_s3, [#allocation9], %s1412_s26, %s1412_s26, %s1413_s27  }
  0x12   :  { %1395 = dma.done.wait [#allocation3], 1024  }
  0x13   :  { %1396 = vsyncadd [#allocation3], 4294966272 }
  0x14   :  { %1397 = dma.done.wait [#allocation6], 4112  }
  0x15   :  { %1398 = vsyncadd [#allocation6], 4294963184 }
  0x16   :  { %1399 = dma.done.wait [#allocation9], 4160  }
  0x17   :  { %1400 = vsyncadd [#allocation9], 4294963136  ;;  %v1030_v0 = vld [vmem:[#allocation7 + $0xe0] sm:$0xf]  ;;  %v1202_v1 = vld [vmem:[#allocation7 + $0xec] sm:$0xf0] }
  0x18   :  { %v1200_v2 = vld [vmem:[#allocation7 + $0xe4] sm:$0xf]  ;;  %v1031_v3 = vor.u32 %v1202_v1, %v1030_v0  ;;  %v1032_v4 = vld [vmem:[#allocation7 + $0xf0] sm:$0xf0]  ;;  %v1038_v5 = vld [vmem:[#allocation7 + $0xe8] sm:$0xf] }
  0x19   :  { %v1203_v6 = vld [vmem:[#allocation7 + $0xf4] sm:$0xf0]  ;;  %v1035_v7 = vor.u32 %v1200_v2, %v1032_v4  ;;  %v1201_v9 = vld [vmem:[#allocation7 + $0xec] sm:$0xf]  ;;  %v1040_v10 = vld [vmem:[#allocation7 + $0xf8] sm:$0xf0] }
  0x1a   :  { %v1039_v8 = vor.u32 %v1203_v6, %v1038_v5  ;;  %v1014_v11 = vld [vmem:[#allocation7 + $0xc0] sm:$0xf]  ;;  %339 = vmatpush.bf16.msra.mxu0 %v1031_v3  ;;  %v1043_v12 = vor.u32 %v1201_v9, %v1040_v10  ;;  %v1198_v13 = vld [vmem:[#allocation7 + $0xcc] sm:$0xf0]  ;;  %v1196_v14 = vld [vmem:[#allocation7 + $0xc4] sm:$0xf] }
  0x1b   :  { %v1016_v15 = vld [vmem:[#allocation7 + $0xd0] sm:$0xf0]  ;;  %368 = vmatpush.bf16.msra.mxu1 %v1035_v7  ;;  %v1015_v16 = vor.u32 %v1198_v13, %v1014_v11  ;;  %v1022_v18 = vld [vmem:[#allocation7 + $0xc8] sm:$0xf]  ;;  %v1199_v19 = vld [vmem:[#allocation7 + $0xd4] sm:$0xf0] }
  0x1c   :  { %397 = vmatpush.bf16.msra.mxu2 %v1039_v8  ;;  %v1019_v17 = vor.u32 %v1196_v14, %v1016_v15  ;;  %v1197_v20 = vld [vmem:[#allocation7 + $0xcc] sm:$0xf]  ;;  %426 = vmatpush.bf16.msra.mxu3 %v1043_v12  ;;  %v1023_v21 = vor.u32 %v1199_v19, %v1022_v18  ;;  %v1024_v22 = vld [vmem:[#allocation7 + $0xd8] sm:$0xf0]  ;;  %v998_v23 = vld [vmem:[#allocation7 + $0xa0] sm:$0xf] }
  0x1d   :  { %v1194_v24 = vld [vmem:[#allocation7 + $0xac] sm:$0xf0]  ;;  %v1027_v25 = vor.u32 %v1197_v20, %v1024_v22  ;;  %v1192_v26 = vld [vmem:[#allocation7 + $0xa4] sm:$0xf]  ;;  %v1000_v27 = vld [vmem:[#allocation7 + $0xb0] sm:$0xf0] }
  0x1e   :  { %v1006_v28 = vld [vmem:[#allocation7 + $0xa8] sm:$0xf]  ;;  %340 = vmatpush.bf16.msra.mxu0 %v1015_v16  ;;  %v999_v29 = vor.u32 %v1194_v24, %v998_v23  ;;  %v1195_v30 = vld [vmem:[#allocation7 + $0xb4] sm:$0xf0]  ;;  %v1193_v31 = vld [vmem:[#allocation7 + $0xac] sm:$0xf]  ;;  %v1003_v33 = vor.u32 %v1192_v26, %v1000_v27 }
  0x1f   :  { %v1008_v32 = vld [vmem:[#allocation7 + $0xb8] sm:$0xf0]  ;;  %369 = vmatpush.bf16.msra.mxu1 %v1019_v17  ;;  %v1007_v34 = vor.u32 %v1195_v30, %v1006_v28  ;;  %v982_v35 = vld [vmem:[#allocation7 + $0x80] sm:$0xf]  ;;  %v1190_v36 = vld [vmem:[#allocation7 + $0x8c] sm:$0xf0] }
  0x20   :  { %398 = vmatpush.bf16.msra.mxu2 %v1023_v21  ;;  %v1188_v37 = vld [vmem:[#allocation7 + $0x84] sm:$0xf]  ;;  %427 = vmatpush.bf16.msra.mxu3 %v1027_v25  ;;  %v1011_v38 = vor.u32 %v1193_v31, %v1008_v32  ;;  %v984_v39 = vld [vmem:[#allocation7 + $0x90] sm:$0xf0]  ;;  %v990_v40 = vld [vmem:[#allocation7 + $0x88] sm:$0xf]  ;;  %v983_v44 = vor.u32 %v1190_v36, %v982_v35 }
  0x21   :  { %v1191_v41 = vld [vmem:[#allocation7 + $0x94] sm:$0xf0]  ;;  %v1189_v42 = vld [vmem:[#allocation7 + $0x8c] sm:$0xf]  ;;  %v992_v43 = vld [vmem:[#allocation7 + $0x98] sm:$0xf0]  ;;  %v987_v45 = vor.u32 %v1188_v37, %v984_v39 }
  0x22   :  { %341 = vmatpush.bf16.msra.mxu0 %v999_v29  ;;  %v991_v46 = vor.u32 %v1191_v41, %v990_v40  ;;  %v966_v47 = vld [vmem:[#allocation7 + $0x60] sm:$0xf]  ;;  %v1186_v48 = vld [vmem:[#allocation7 + $0x6c] sm:$0xf0]  ;;  %v1184_v49 = vld [vmem:[#allocation7 + $0x64] sm:$0xf]  ;;  %v995_v50 = vor.u32 %v1189_v42, %v992_v43 }
  0x23   :  { %370 = vmatpush.bf16.msra.mxu1 %v1003_v33  ;;  %v968_v51 = vld [vmem:[#allocation7 + $0x70] sm:$0xf0]  ;;  %v974_v52 = vld [vmem:[#allocation7 + $0x68] sm:$0xf]  ;;  %v1187_v53 = vld [vmem:[#allocation7 + $0x74] sm:$0xf0]  ;;  %v967_v56 = vor.u32 %v1186_v48, %v966_v47 }
  0x24   :  { %399 = vmatpush.bf16.msra.mxu2 %v1007_v34  ;;  %428 = vmatpush.bf16.msra.mxu3 %v1011_v38  ;;  %v1185_v54 = vld [vmem:[#allocation7 + $0x6c] sm:$0xf]  ;;  %v976_v55 = vld [vmem:[#allocation7 + $0x78] sm:$0xf0]  ;;  %v971_v57 = vor.u32 %v1184_v49, %v968_v51  ;;  %v975_v58 = vor.u32 %v1187_v53, %v974_v52  ;;  %v950_v59 = vld [vmem:[#allocation7 + $0x40] sm:$0xf] }
  0x25   :  { %v1182_v60 = vld [vmem:[#allocation7 + $0x4c] sm:$0xf0]  ;;  %v1180_v61 = vld [vmem:[#allocation7 + $0x44] sm:$0xf]  ;;  %v979_v62 = vor.u32 %v1185_v54, %v976_v55  ;;  %v952_v63 = vld [vmem:[#allocation7 + $0x50] sm:$0xf0] }
  0x26   :  { %342 = vmatpush.bf16.msra.mxu0 %v983_v44  ;;  %v958_v0 = vld [vmem:[#allocation7 + $0x48] sm:$0xf]  ;;  %v1183_v1 = vld [vmem:[#allocation7 + $0x54] sm:$0xf0]  ;;  %v1181_v2 = vld [vmem:[#allocation7 + $0x4c] sm:$0xf]  ;;  %v951_v5 = vor.u32 %v1182_v60, %v950_v59  ;;  %v955_v9 = vor.u32 %v1180_v61, %v952_v63 }
  0x27   :  { %371 = vmatpush.bf16.msra.mxu1 %v987_v45  ;;  %v960_v3 = vld [vmem:[#allocation7 + $0x58] sm:$0xf0]  ;;  %v934_v4 = vld [vmem:[#allocation7 + $0x20] sm:$0xf]  ;;  %v1178_v6 = vld [vmem:[#allocation7 + $0x2c] sm:$0xf0]  ;;  %v959_v10 = vor.u32 %v1183_v1, %v958_v0 }
  0x28   :  { %400 = vmatpush.bf16.msra.mxu2 %v991_v46  ;;  %429 = vmatpush.bf16.msra.mxu3 %v995_v50  ;;  %v1176_v7 = vld [vmem:[#allocation7 + $0x24] sm:$0xf]  ;;  %v936_v8 = vld [vmem:[#allocation7 + $0x30] sm:$0xf0]  ;;  %v942_v11 = vld [vmem:[#allocation7 + $0x28] sm:$0xf]  ;;  %v963_v14 = vor.u32 %v1181_v2, %v960_v3  ;;  %v935_v19 = vor.u32 %v1178_v6, %v934_v4 }
  0x29   :  { %v1179_v12 = vld [vmem:[#allocation7 + $0x34] sm:$0xf0]  ;;  %v1177_v13 = vld [vmem:[#allocation7 + $0x2c] sm:$0xf]  ;;  %v944_v15 = vld [vmem:[#allocation7 + $0x38] sm:$0xf0]  ;;  %v939_v20 = vor.u32 %v1176_v7, %v936_v8 }
  0x2a   :  { %343 = vmatpush.bf16.msra.mxu0 %v967_v56  ;;  %v101_v16 = vld [vmem:[#allocation2] sm:$0xff]  ;;  %v102_v17 = vld [vmem:[#allocation2 + $0x8] sm:$0xff]  ;;  %v943_v23 = vor.u32 %v1179_v12, %v942_v11  ;;  %v1174_v24 = vld [vmem:[#allocation7 + $0xc] sm:$0xf0]  ;;  %v947_v28 = vor.u32 %v1177_v13, %v944_v15  ;;  %s901_s10 = sshll.u32 %s1594_s7, 4  ;;  %s902_s10 = int_to_ptr.hbm [resolvable:$true] %s901_s10 }
  0x2b   :  { %372 = vmatpush.bf16.msra.mxu1 %v971_v57  ;;  %v1473_v18 = vld [vmem:[#allocation5] ss:$0 sm:$0xff]  ;;  %v918_v21 = vld [vmem:[#allocation7] sm:$0xf]  ;;  %v1172_v25 = vld [vmem:[#allocation7 + $0x4] sm:$0xf] }
  0x2c   :  { %401 = vmatpush.bf16.msra.mxu2 %v975_v58  ;;  %430 = vmatpush.bf16.msra.mxu3 %v979_v62  ;;  %v1478_v22 = vld [vmem:[%s1589_s2] ss:$0 sm:$0xff]  ;;  %v113_v26 = vmul.f32 %v1473_v18, %v101_v16  ;;  %v114_v27 = vmul.f32 %v1473_v18, %v102_v17  ;;  %v920_v29 = vld [vmem:[#allocation7 + $0x10] sm:$0xf0]  ;;  %v926_v30 = vld [vmem:[#allocation7 + $0x8] sm:$0xf]  ;;  %v919_v36 = vor.u32 %v1174_v24, %v918_v21 }
  0x2d   :  { %v1175_v31 = vld [vmem:[#allocation7 + $0x14] sm:$0xf0]  ;;  %v1173_v32 = vld [vmem:[#allocation7 + $0xc] sm:$0xf]  ;;  %v928_v33 = vld [vmem:[#allocation7 + $0x18] sm:$0xf0]  ;;  %v923_v37 = vor.u32 %v1172_v25, %v920_v29 }
  0x2e   :  { %344 = vmatpush.bf16.msra.mxu0 %v951_v5  ;;  %v1483_v34 = vadd.f32 %v1478_v22, %v113_v26  ;;  %v1486_v35 = vadd.f32 %v1478_v22, %v114_v27  ;;  %v927_v38 = vor.u32 %v1175_v31, %v926_v30  ;;  %v931_v39 = vor.u32 %v1173_v32, %v928_v33  ;;  %v103_v41 = vld [vmem:[#allocation2 + $0x10] sm:$0xff]  ;;  %v104_v42 = vld [vmem:[#allocation2 + $0x18] sm:$0xff]  ;;  %v105_v48 = vld [vmem:[#allocation2 + $0x20] sm:$0xff] }
  0x2f   :  { %373 = vmatpush.bf16.msra.mxu1 %v955_v9  ;;  %v115_v43 = vmul.f32 %v1473_v18, %v103_v41  ;;  %v116_v44 = vmul.f32 %v1473_v18, %v104_v42  ;;  %v106_v49 = vld [vmem:[#allocation2 + $0x28] sm:$0xff]  ;;  %v1227_v50 = vld [vmem:[#allocation10 + $0xb8] sm:$0xff]  ;;  %v117_v54 = vmul.f32 %v1473_v18, %v105_v48  ;;  %v1226_v56 = vld [vmem:[#allocation10 + $0xb0] sm:$0xff] }
  0x30   :  { %402 = vmatpush.bf16.msra.mxu2 %v959_v10  ;;  %431 = vmatpush.bf16.msra.mxu3 %v963_v14  ;;  %v133_v40 = vpack.c.bf16 %v1486_v35, %v1483_v34  ;;  %v1211_v51 = vld [vmem:[#allocation10 + $0x38] sm:$0xff]  ;;  %v118_v55 = vmul.f32 %v1473_v18, %v106_v49  ;;  %v1210_v57 = vld [vmem:[#allocation10 + $0x30] sm:$0xff]  ;;  %v1225_v62 = vld [vmem:[#allocation10 + $0xa8] sm:$0xff] }
  0x31   :  { %v1493_v45 = vadd.f32 %v1478_v22, %v115_v43  ;;  %v1496_v46 = vadd.f32 %v1478_v22, %v116_v44  ;;  %v1235_v52 = vld [vmem:[#allocation10 + $0xf8] sm:$0xff]  ;;  %v1234_v58 = vld [vmem:[#allocation10 + $0xf0] sm:$0xff]  ;;  %v1503_v60 = vadd.f32 %v1478_v22, %v117_v54  ;;  %v1209_v63 = vld [vmem:[#allocation10 + $0x28] sm:$0xff] }
  0x32   :  { %345 = vmatpush.bf16.msra.mxu0 %v935_v19  ;;  %v1219_v53 = vld [vmem:[#allocation10 + $0x78] sm:$0xff]  ;;  %v1218_v59 = vld [vmem:[#allocation10 + $0x70] sm:$0xff]  ;;  %v1506_v61 = vadd.f32 %v1478_v22, %v118_v55  ;;  %v1233_v0 = vld [vmem:[#allocation10 + $0xe8] sm:$0xff] }
  0x33   :  { %374 = vmatpush.bf16.msra.mxu1 %v939_v20  ;;  %v134_v47 = vpack.c.bf16 %v1496_v46, %v1493_v45  ;;  %v1217_v1 = vld [vmem:[#allocation10 + $0x68] sm:$0xff]  ;;  %v1224_v3 = vld [vmem:[#allocation10 + $0xa0] sm:$0xff]  ;;  %v1223_v7 = vld [vmem:[#allocation10 + $0x98] sm:$0xff] }
  0x34   :  { %403 = vmatpush.bf16.msra.mxu2 %v943_v23  ;;  %432 = vmatpush.bf16.msra.mxu3 %v947_v28  ;;  %v135_v2 = vpack.c.bf16 %v1506_v61, %v1503_v60  ;;  %v1208_v4 = vld [vmem:[#allocation10 + $0x20] sm:$0xff]  ;;  %v107_v8 = vld [vmem:[#allocation2 + $0x30] sm:$0xff]  ;;  %v108_v9 = vld [vmem:[#allocation2 + $0x38] sm:$0xff] }
  0x35   :  { %v1232_v5 = vld [vmem:[#allocation10 + $0xe0] sm:$0xff]  ;;  %v1207_v10 = vld [vmem:[#allocation10 + $0x18] sm:$0xff]  ;;  %v119_v13 = vmul.f32 %v1473_v18, %v107_v8  ;;  %v120_v14 = vmul.f32 %v1473_v18, %v108_v9  ;;  %v1222_v15 = vld [vmem:[#allocation10 + $0x90] sm:$0xff] }
  0x36   :  { %346 = vmatpush.bf16.msra.mxu0 %v919_v36  ;;  %v1216_v6 = vld [vmem:[#allocation10 + $0x60] sm:$0xff]  ;;  %v1231_v11 = vld [vmem:[#allocation10 + $0xd8] sm:$0xff]  ;;  %v1206_v16 = vld [vmem:[#allocation10 + $0x10] sm:$0xff] }
  0x37   :  { %375 = vmatpush.bf16.msra.mxu1 %v923_v37  ;;  %v1215_v12 = vld [vmem:[#allocation10 + $0x58] sm:$0xff]  ;;  %v1230_v17 = vld [vmem:[#allocation10 + $0xd0] sm:$0xff]  ;;  %v1513_v19 = vadd.f32 %v1478_v22, %v119_v13  ;;  %v1516_v20 = vadd.f32 %v1478_v22, %v120_v14  ;;  %v1221_v23 = vld [vmem:[#allocation10 + $0x88] sm:$0xff] }
  0x38   :  { %404 = vmatpush.bf16.msra.mxu2 %v927_v38  ;;  %433 = vmatpush.bf16.msra.mxu3 %v931_v39  ;;  %v1214_v18 = vld [vmem:[#allocation10 + $0x50] sm:$0xff]  ;;  %v1205_v24 = vld [vmem:[#allocation10 + $0x8] sm:$0xff]  ;;  %v1204_v26 = vld [vmem:[#allocation10] sm:$0xff] }
  0x39   :  { %347 = vmatmul.bf16.vlgmr.msra.gmra.mxu0 %v133_v40  ;;  %v136_v21 = vpack.c.bf16 %v1516_v20, %v1513_v19  ;;  %v1213_v25 = vld [vmem:[#allocation10 + $0x48] sm:$0xff]  ;;  %v1212_v27 = vld [vmem:[#allocation10 + $0x40] sm:$0xff]  ;;  %v169_v30 = vld [vmem:[#allocation8] sm:$0xf] }
  0x3a   :  { %376 = vmatmul.bf16.vlgmr.msra.gmra.mxu1 %v133_v40  ;;  %763 = vmatpush.bf16.msrb.mxu0 %v1211_v51  ;;  %v1229_v22 = vld [vmem:[#allocation10 + $0xc8] sm:$0xff]  ;;  %v1220_v28 = vld [vmem:[#allocation10 + $0x80] sm:$0xff]  ;;  %v1520_v32 = vperm.slane %v169_v30, 0  ;;  %v1522_v36 = vperm.slane %v169_v30, 1  ;;  %v1527_v48 = vperm.slane %v169_v30, 2 }
  0x3b   :  { %405 = vmatmul.bf16.vlgmr.msra.gmra.mxu2 %v133_v40  ;;  %434 = vmatmul.bf16.vlgmr.msra.gmra.mxu3 %v133_v40  ;;  %v1228_v29 = vld [vmem:[#allocation10 + $0xc0] sm:$0xff] }
  0x3c   :  { %821 = vmatpush.bf16.msrb.mxu2 %v1227_v50  ;;  %850 = vmatpush.bf16.msrb.mxu3 %v1235_v52  ;;  %v1530_v50 = vperm.slane %v169_v30, 3 }
  0x3d   :  { %792 = vmatpush.bf16.msrb.mxu1 %v1219_v53 }
  0x3e   :  { %764 = vmatpush.bf16.msrb.mxu0 %v1210_v57 }
  0x40   :  { %822 = vmatpush.bf16.msrb.mxu2 %v1226_v56  ;;  %851 = vmatpush.bf16.msrb.mxu3 %v1234_v58 }
  0x41   :  { %793 = vmatpush.bf16.msrb.mxu1 %v1218_v59 }
  0x42   :  { %765 = vmatpush.bf16.msrb.mxu0 %v1209_v63 }
  0x44   :  { %823 = vmatpush.bf16.msrb.mxu2 %v1225_v62  ;;  %852 = vmatpush.bf16.msrb.mxu3 %v1233_v0 }
  0x45   :  { %794 = vmatpush.bf16.msrb.mxu1 %v1217_v1 }
  0x46   :  { %766 = vmatpush.bf16.msrb.mxu0 %v1208_v4 }
  0x48   :  { %824 = vmatpush.bf16.msrb.mxu2 %v1224_v3  ;;  %853 = vmatpush.bf16.msrb.mxu3 %v1232_v5 }
  0x49   :  { %352 = vmatmul.bf16.gmra.mxu0 %v134_v47  ;;  %795 = vmatpush.bf16.msrb.mxu1 %v1216_v6 }
  0x4a   :  { %381 = vmatmul.bf16.gmra.mxu1 %v134_v47  ;;  %767 = vmatpush.bf16.msrb.mxu0 %v1207_v10 }
  0x4b   :  { %410 = vmatmul.bf16.gmra.mxu2 %v134_v47  ;;  %439 = vmatmul.bf16.gmra.mxu3 %v134_v47 }
  0x4c   :  { %825 = vmatpush.bf16.msrb.mxu2 %v1223_v7  ;;  %854 = vmatpush.bf16.msrb.mxu3 %v1231_v11 }
  0x4d   :  { %796 = vmatpush.bf16.msrb.mxu1 %v1215_v12 }
  0x4e   :  { %768 = vmatpush.bf16.msrb.mxu0 %v1206_v16 }
  0x50   :  { %826 = vmatpush.bf16.msrb.mxu2 %v1222_v15  ;;  %855 = vmatpush.bf16.msrb.mxu3 %v1230_v17 }
  0x51   :  { %797 = vmatpush.bf16.msrb.mxu1 %v1214_v18 }
  0x52   :  { %769 = vmatpush.bf16.msrb.mxu0 %v1205_v24 }
  0x54   :  { %827 = vmatpush.bf16.msrb.mxu2 %v1221_v23  ;;  %856 = vmatpush.bf16.msrb.mxu3 %v1229_v22 }
  0x55   :  { %798 = vmatpush.bf16.msrb.mxu1 %v1213_v25 }
  0x56   :  { %770 = vmatpush.bf16.msrb.mxu0 %v1204_v26 }
  0x58   :  { %828 = vmatpush.bf16.msrb.mxu2 %v1220_v28  ;;  %857 = vmatpush.bf16.msrb.mxu3 %v1228_v29 }
  0x59   :  { %357 = vmatmul.bf16.gmra.mxu0 %v135_v2  ;;  %799 = vmatpush.bf16.msrb.mxu1 %v1212_v27 }
  0x5a   :  { %386 = vmatmul.bf16.gmra.mxu1 %v135_v2 }
  0x5b   :  { %415 = vmatmul.bf16.gmra.mxu2 %v135_v2  ;;  %444 = vmatmul.bf16.gmra.mxu3 %v135_v2 }
  0x69   :  { %362 = vmatmul.bf16.gmra.mxu0 %v136_v21 }
  0x6a   :  { %391 = vmatmul.bf16.gmra.mxu1 %v136_v21 }
  0x6b   :  { %420 = vmatmul.bf16.gmra.mxu2 %v136_v21  ;;  %449 = vmatmul.bf16.gmra.mxu3 %v136_v21 }
  0xb6   :  { %v348_v31 = vpop.f32.mrf.mxu0 }
  0xb7   :  { %v377_v33 = vpop.f32.mrf.mxu1  ;;  %v349_v37 = vadd.f32 %v348_v31, %v1520_v32 }
  0xb8   :  { %v378_v38 = vadd.f32 %v377_v33, %v1522_v36 }
  0xb9   :  { %v455_v42 = vmax.f32 %v349_v37, 0.0 }
  0xba   :  { %v456_v47 = vmax.f32 %v378_v38, 0.0 }
  0xbe   :  { %v406_v39 = vpop.f32.mrf.mxu2  ;;  %v435_v40 = vpop.f32.mrf.mxu3 }
  0xbf   :  { %v350_v41 = vpop.f32.mrf.mxu0  ;;  %v379_v44 = vpop.f32.mrf.mxu1  ;;  %v407_v54 = vadd.f32 %v406_v39, %v1527_v48  ;;  %v436_v56 = vadd.f32 %v435_v40, %v1530_v50 }
  0xc0   :  { %v351_v43 = vadd.f32 %v350_v41, %v1520_v32  ;;  %v380_v49 = vadd.f32 %v379_v44, %v1522_v36 }
  0xc1   :  { %v457_v1 = vmax.f32 %v407_v54, 0.0  ;;  %v458_v3 = vmax.f32 %v436_v56, 0.0 }
  0xc2   :  { %v459_v51 = vmax.f32 %v351_v43, 0.0  ;;  %v460_v52 = vmax.f32 %v380_v49, 0.0 }
  0xc4   :  { %v487_v53 = vpack.c.bf16 %v459_v51, %v455_v42  ;;  %v488_v55 = vpack.c.bf16 %v460_v52, %v456_v47 }
  0xc6   :  { %v408_v57 = vpop.f32.mrf.mxu2  ;;  %771 = vmatmul.bf16.vlgmr.msrb.gmra.mxu0 %v487_v53  ;;  %v437_v59 = vpop.f32.mrf.mxu3  ;;  %800 = vmatmul.bf16.vlgmr.msrb.gmra.mxu1 %v488_v55 }
  0xc7   :  { %v409_v58 = vadd.f32 %v408_v57, %v1527_v48  ;;  %v353_v62 = vpop.f32.mrf.mxu0  ;;  %v438_v63 = vadd.f32 %v437_v59, %v1530_v50  ;;  %v382_v0 = vpop.f32.mrf.mxu1 }
  0xc8   :  { %v354_v7 = vadd.f32 %v353_v62, %v1520_v32  ;;  %v383_v8 = vadd.f32 %v382_v0, %v1522_v36 }
  0xc9   :  { %v461_v2 = vmax.f32 %v409_v58, 0.0  ;;  %v462_v4 = vmax.f32 %v438_v63, 0.0 }
  0xca   :  { %v463_v12 = vmax.f32 %v354_v7, 0.0  ;;  %v464_v15 = vmax.f32 %v383_v8, 0.0 }
  0xcb   :  { %v489_v5 = vpack.c.bf16 %v461_v2, %v457_v1  ;;  %v490_v6 = vpack.c.bf16 %v462_v4, %v458_v3 }
  0xcd   :  { %829 = vmatmul.bf16.vlgmr.msrb.gmra.mxu2 %v489_v5  ;;  %858 = vmatmul.bf16.vlgmr.msrb.gmra.mxu3 %v490_v6 }
  0xce   :  { %v411_v9 = vpop.f32.mrf.mxu2  ;;  %v440_v10 = vpop.f32.mrf.mxu3 }
  0xcf   :  { %v355_v11 = vpop.f32.mrf.mxu0  ;;  %v384_v14 = vpop.f32.mrf.mxu1  ;;  %v412_v23 = vadd.f32 %v411_v9, %v1527_v48  ;;  %v441_v25 = vadd.f32 %v440_v10, %v1530_v50 }
  0xd0   :  { %v356_v13 = vadd.f32 %v355_v11, %v1520_v32  ;;  %v385_v16 = vadd.f32 %v384_v14, %v1522_v36 }
  0xd1   :  { %v465_v31 = vmax.f32 %v412_v23, 0.0  ;;  %v466_v37 = vmax.f32 %v441_v25, 0.0 }
  0xd2   :  { %v467_v17 = vmax.f32 %v356_v13, 0.0  ;;  %v468_v21 = vmax.f32 %v385_v16, 0.0 }
  0xd4   :  { %v491_v18 = vpack.c.bf16 %v467_v17, %v463_v12  ;;  %v492_v24 = vpack.c.bf16 %v468_v21, %v464_v15 }
  0xd6   :  { %v413_v22 = vpop.f32.mrf.mxu2  ;;  %776 = vmatmul.bf16.gmra.mxu0 %v491_v18  ;;  %v442_v27 = vpop.f32.mrf.mxu3  ;;  %805 = vmatmul.bf16.gmra.mxu1 %v492_v24 }
  0xd7   :  { %v414_v26 = vadd.f32 %v413_v22, %v1527_v48  ;;  %v358_v28 = vpop.f32.mrf.mxu0  ;;  %v443_v29 = vadd.f32 %v442_v27, %v1530_v50  ;;  %v387_v30 = vpop.f32.mrf.mxu1 }
  0xd8   :  { %v359_v40 = vadd.f32 %v358_v28, %v1520_v32  ;;  %v388_v42 = vadd.f32 %v387_v30, %v1522_v36 }
  0xd9   :  { %v469_v33 = vmax.f32 %v414_v26, 0.0  ;;  %v470_v38 = vmax.f32 %v443_v29, 0.0 }
  0xda   :  { %v471_v49 = vmax.f32 %v359_v40, 0.0  ;;  %v472_v53 = vmax.f32 %v388_v42, 0.0 }
  0xdb   :  { %v493_v39 = vpack.c.bf16 %v469_v33, %v465_v31  ;;  %v494_v41 = vpack.c.bf16 %v470_v38, %v466_v37 }
  0xdd   :  { %834 = vmatmul.bf16.gmra.mxu2 %v493_v39  ;;  %863 = vmatmul.bf16.gmra.mxu3 %v494_v41 }
  0xde   :  { %v416_v43 = vpop.f32.mrf.mxu2  ;;  %v445_v44 = vpop.f32.mrf.mxu3 }
  0xdf   :  { %v360_v47 = vpop.f32.mrf.mxu0  ;;  %v389_v52 = vpop.f32.mrf.mxu1  ;;  %v417_v58 = vadd.f32 %v416_v43, %v1527_v48  ;;  %v446_v62 = vadd.f32 %v445_v44, %v1530_v50  ;;  %v1563_v43 = vld [vmem:[%s1593_s6] ss:$0 sm:$0xff]  ;;  %s1414_s6 = smov [#allocation11]  }
  0xe0   :  { %v361_v51 = vadd.f32 %v360_v47, %v1520_v32  ;;  %v390_v54 = vadd.f32 %v389_v52, %v1522_v36  ;;  %s899_s30 = sshll.u32 %s1414_s6, 4  ;;  %s900_s30 = int_to_ptr.vmem [resolvable:$true] %s899_s30 }
  0xe1   :  { %v473_v5 = vmax.f32 %v417_v58, 0.0  ;;  %v474_v7 = vmax.f32 %v446_v62, 0.0 }
  0xe2   :  { %v475_v55 = vmax.f32 %v361_v51, 0.0  ;;  %v476_v56 = vmax.f32 %v390_v54, 0.0 }
  0xe4   :  { %v495_v57 = vpack.c.bf16 %v475_v55, %v471_v49  ;;  %v496_v59 = vpack.c.bf16 %v476_v56, %v472_v53 }
  0xe6   :  { %v418_v63 = vpop.f32.mrf.mxu2  ;;  %781 = vmatmul.bf16.gmra.mxu0 %v495_v57  ;;  %v447_v1 = vpop.f32.mrf.mxu3  ;;  %810 = vmatmul.bf16.gmra.mxu1 %v496_v59 }
  0xe7   :  { %v419_v0 = vadd.f32 %v418_v63, %v1527_v48  ;;  %v363_v2 = vpop.f32.mrf.mxu0  ;;  %v448_v3 = vadd.f32 %v447_v1, %v1530_v50  ;;  %v392_v4 = vpop.f32.mrf.mxu1 }
  0xe8   :  { %v364_v10 = vadd.f32 %v363_v2, %v1520_v32  ;;  %v393_v12 = vadd.f32 %v392_v4, %v1522_v36 }
  0xe9   :  { %v477_v6 = vmax.f32 %v419_v0, 0.0  ;;  %v478_v8 = vmax.f32 %v448_v3, 0.0 }
  0xea   :  { %v479_v16 = vmax.f32 %v364_v10, 0.0  ;;  %v480_v18 = vmax.f32 %v393_v12, 0.0 }
  0xeb   :  { %v497_v9 = vpack.c.bf16 %v477_v6, %v473_v5  ;;  %v498_v11 = vpack.c.bf16 %v478_v8, %v474_v7 }
  0xed   :  { %839 = vmatmul.bf16.gmra.mxu2 %v497_v9  ;;  %868 = vmatmul.bf16.gmra.mxu3 %v498_v11 }
  0xee   :  { %v421_v13 = vpop.f32.mrf.mxu2  ;;  %v450_v14 = vpop.f32.mrf.mxu3 }
  0xef   :  { %v365_v15 = vpop.f32.mrf.mxu0  ;;  %v394_v21 = vpop.f32.mrf.mxu1  ;;  %v422_v26 = vadd.f32 %v421_v13, %v1527_v48  ;;  %v451_v28 = vadd.f32 %v450_v14, %v1530_v50 }
  0xf0   :  { %v366_v17 = vadd.f32 %v365_v15, %v1520_v32  ;;  %v395_v23 = vadd.f32 %v394_v21, %v1522_v36 }
  0xf1   :  { %v481_v33 = vmax.f32 %v422_v26, 0.0  ;;  %v482_v38 = vmax.f32 %v451_v28, 0.0 }
  0xf2   :  { %v483_v24 = vmax.f32 %v366_v17, 0.0  ;;  %v484_v25 = vmax.f32 %v395_v23, 0.0 }
  0xf4   :  { %v499_v22 = vpack.c.bf16 %v483_v24, %v479_v16  ;;  %v500_v27 = vpack.c.bf16 %v484_v25, %v480_v18 }
  0xf6   :  { %v423_v29 = vpop.f32.mrf.mxu2  ;;  %786 = vmatmul.bf16.gmra.mxu0 %v499_v22  ;;  %v452_v31 = vpop.f32.mrf.mxu3  ;;  %815 = vmatmul.bf16.gmra.mxu1 %v500_v27 }
  0xf7   :  { %v424_v30 = vadd.f32 %v423_v29, %v1527_v48  ;;  %v453_v32 = vadd.f32 %v452_v31, %v1530_v50 }
  0xf9   :  { %v485_v37 = vmax.f32 %v424_v30, 0.0  ;;  %v486_v36 = vmax.f32 %v453_v32, 0.0 }
  0xfb   :  { %v501_v39 = vpack.c.bf16 %v485_v37, %v481_v33  ;;  %v502_v40 = vpack.c.bf16 %v486_v36, %v482_v38 }
  0xfd   :  { %844 = vmatmul.bf16.gmra.mxu2 %v501_v39  ;;  %873 = vmatmul.bf16.gmra.mxu3 %v502_v40 }
 0x143   :  { %v772_v41 = vpop.f32.mrf.mxu0  ;;  %v801_v42 = vpop.f32.mrf.mxu1 }
 0x144   :  { %v773_v48 = vadd.f32 %v1563_v43, %v772_v41 }
 0x146   :  { %v802_v50 = vadd.f32 %v801_v42, %v773_v48 }
 0x14b   :  { %v774_v44 = vpop.f32.mrf.mxu0  ;;  %v803_v47 = vpop.f32.mrf.mxu1 }
 0x14c   :  { %v775_v53 = vadd.f32 %v1563_v43, %v774_v44 }
 0x14e   :  { %v804_v58 = vadd.f32 %v803_v47, %v775_v53 }
 0x150   :  { %v830_v49 = vpop.f32.mrf.mxu2  ;;  %v859_v52 = vpop.f32.mrf.mxu3 }
 0x151   :  { %v831_v51 = vadd.f32 %v830_v49, %v802_v50 }
 0x153   :  { %v860_v54 = vadd.f32 %v859_v52, %v831_v51  ;;  %v777_v55 = vpop.f32.mrf.mxu0  ;;  %v806_v56 = vpop.f32.mrf.mxu1 }
 0x154   :  { %v778_v0 = vadd.f32 %v1563_v43, %v777_v55 }
 0x155   :  { %v879_v57 = vadd.f32 %v860_v54, %v1483_v34 }
 0x156   :  { %v807_v5 = vadd.f32 %v806_v56, %v778_v0 }
 0x157   :  { %887 = vst [vmem:[#allocation11] sm:$0xff] %v879_v57 }
 0x158   :  { %v832_v59 = vpop.f32.mrf.mxu2  ;;  %v861_v63 = vpop.f32.mrf.mxu3 }
 0x159   :  { %v833_v62 = vadd.f32 %v832_v59, %v804_v58 }
 0x15b   :  { %v862_v1 = vadd.f32 %v861_v63, %v833_v62  ;;  %v779_v2 = vpop.f32.mrf.mxu0  ;;  %v808_v4 = vpop.f32.mrf.mxu1 }
 0x15c   :  { %v780_v9 = vadd.f32 %v1563_v43, %v779_v2 }
 0x15d   :  { %v880_v3 = vadd.f32 %v862_v1, %v1486_v35 }
 0x15e   :  { %v809_v12 = vadd.f32 %v808_v4, %v780_v9 }
 0x15f   :  { %888 = vst [vmem:[#allocation11 + $0x8] sm:$0xff] %v880_v3 }
 0x160   :  { %v835_v6 = vpop.f32.mrf.mxu2  ;;  %v864_v8 = vpop.f32.mrf.mxu3 }
 0x161   :  { %v836_v7 = vadd.f32 %v835_v6, %v807_v5 }
 0x163   :  { %v865_v34 = vadd.f32 %v864_v8, %v836_v7  ;;  %v782_v10 = vpop.f32.mrf.mxu0  ;;  %v811_v13 = vpop.f32.mrf.mxu1 }
 0x164   :  { %v783_v35 = vadd.f32 %v1563_v43, %v782_v10 }
 0x165   :  { %v881_v11 = vadd.f32 %v865_v34, %v1493_v45 }
 0x166   :  { %v812_v23 = vadd.f32 %v811_v13, %v783_v35 }
 0x167   :  { %889 = vst [vmem:[#allocation11 + $0x10] sm:$0xff] %v881_v11 }
 0x168   :  { %v837_v14 = vpop.f32.mrf.mxu2  ;;  %v866_v16 = vpop.f32.mrf.mxu3 }
 0x169   :  { %v838_v15 = vadd.f32 %v837_v14, %v809_v12 }
 0x16b   :  { %v867_v17 = vadd.f32 %v866_v16, %v838_v15  ;;  %v784_v21 = vpop.f32.mrf.mxu0  ;;  %v813_v26 = vpop.f32.mrf.mxu1 }
 0x16c   :  { %v785_v45 = vadd.f32 %v1563_v43, %v784_v21 }
 0x16d   :  { %v882_v18 = vadd.f32 %v867_v17, %v1496_v46 }
 0x16e   :  { %v814_v30 = vadd.f32 %v813_v26, %v785_v45 }
 0x16f   :  { %890 = vst [vmem:[#allocation11 + $0x18] sm:$0xff] %v882_v18 }
 0x170   :  { %v840_v24 = vpop.f32.mrf.mxu2  ;;  %v869_v22 = vpop.f32.mrf.mxu3 }
 0x171   :  { %v841_v25 = vadd.f32 %v840_v24, %v812_v23 }
 0x173   :  { %v870_v27 = vadd.f32 %v869_v22, %v841_v25  ;;  %v787_v29 = vpop.f32.mrf.mxu0  ;;  %v816_v38 = vpop.f32.mrf.mxu1 }
 0x174   :  { %v788_v37 = vadd.f32 %v1563_v43, %v787_v29 }
 0x175   :  { %v883_v28 = vadd.f32 %v870_v27, %v1503_v60 }
 0x176   :  { %v817_v39 = vadd.f32 %v816_v38, %v788_v37 }
 0x177   :  { %891 = vst [vmem:[#allocation11 + $0x20] sm:$0xff] %v883_v28 }
 0x178   :  { %v842_v31 = vpop.f32.mrf.mxu2  ;;  %v871_v33 = vpop.f32.mrf.mxu3 }
 0x179   :  { %v843_v32 = vadd.f32 %v842_v31, %v814_v30 }
 0x17b   :  { %v872_v46 = vadd.f32 %v871_v33, %v843_v32  ;;  %v789_v40 = vpop.f32.mrf.mxu0  ;;  %v818_v50 = vpop.f32.mrf.mxu1 }
 0x17c   :  { %v790_v60 = vadd.f32 %v1563_v43, %v789_v40 }
 0x17d   :  { %v884_v36 = vadd.f32 %v872_v46, %v1506_v61 }
 0x17e   :  { %v819_v49 = vadd.f32 %v818_v50, %v790_v60 }
 0x17f   :  { %892 = vst [vmem:[#allocation11 + $0x28] sm:$0xff] %v884_v36 }
 0x180   :  { %v845_v41 = vpop.f32.mrf.mxu2  ;;  %v874_v48 = vpop.f32.mrf.mxu3 }
 0x181   :  { %v846_v42 = vadd.f32 %v845_v41, %v817_v39 }
 0x183   :  { %v875_v44 = vadd.f32 %v874_v48, %v846_v42 }
 0x185   :  { %v885_v47 = vadd.f32 %v875_v44, %v1513_v19 }
 0x187   :  { %893 = vst [vmem:[#allocation11 + $0x30] sm:$0xff] %v885_v47 }
 0x188   :  { %v847_v51 = vpop.f32.mrf.mxu2  ;;  %v876_v53 = vpop.f32.mrf.mxu3 }
 0x189   :  { %v848_v52 = vadd.f32 %v847_v51, %v819_v49 }
 0x18b   :  { %v877_v61 = vadd.f32 %v876_v53, %v848_v52 }
 0x18d   :  { %v886_v54 = vadd.f32 %v877_v61, %v1516_v20 }
 0x18f   :  { %894 = vst [vmem:[#allocation11 + $0x38] sm:$0xff] %v886_v54 }
 0x190   :  { %907 = dma.vmem_to_hbm [thread:$0]  %s900_s30, 1024, %s902_s10, [#allocation4], %s1406_s18, %s1406_s18, %s1407_s4  }
 0x191   :  { %1401 = dma.done.wait [#allocation4], 1024  }
 0x192   :  { %1402 = vsyncadd [#allocation4], 4294966272 }
 0x193   :  { %912 = vsyncpa [#allocation3], 1 }
 0x194   :  { %913 = vsyncpa [#allocation6], 1 }
 0x195   :  { %914 = vsyncpa [#allocation9], 1 }
 0x196   :  { %915 = vsyncpa [#allocation4], 1 }

</bundles_post_ra>
